<compile_context>
chip_gen: v5e
topology: v5e:2x2
jax: 0.10.0
libtpu: 0.0.40
codegen_flags: <defaults>
</compile_context>

<pallas_src>
from functools import partial

import jax
import jax.numpy as jnp
from jax import lax
from jax.experimental import pallas as pl
from jax.experimental.pallas import tpu as pltpu

NUM_LAYERS = 1   # the PyTorch module hard-codes a single LSTM layer
T_CHUNK = 8      # time-steps per grid iteration (tune 8..16)

# Generation-aware VMEM capacity (128 MiB on v5e/v6e, 64 MiB per TC on v7x).
try:
    _VMEM_CAP = int(pltpu.get_tpu_info().vmem_capacity_bytes)
except Exception:  # conservative fallback if the query is unavailable
    _VMEM_CAP = 64 * 1024 * 1024


def _round_up(n, m):
    return ((n + m - 1) // m) * m


def _lstm_chunk_kernel(x_ref, wih_t_ref, wcomb_ref, b_ref, whr_t_ref,
                       out_ref, h_sc, c_sc, hall_sc, xg_sc, *, p_real):
    """One time-chunk of the LSTM recurrence + projection + log-softmax.

    Grid: (num_chunks,) over time, sequential ("arbitrary").
      x_ref     : (T, I)        this chunk of the input sequence
      wih_t_ref : (I, 4Hp)      W_ih^T, gate columns reordered to (i, f, o, g)
      wcomb_ref : (Hp, 4Hp)     W_hr^T @ W_hh^T (fused projection->recurrent)
      b_ref     : (1, 4Hp)      b_ih + b_hh (f32)
      whr_t_ref : (Hp, Ppad)    W_hr^T, output lanes zero-padded to 128-multiple
      out_ref   : (T, Ppad)     log-softmaxed LSTM outputs for this chunk
      h_sc      : (1, Hp) f32   o*tanh(c), carried across chunks
      c_sc      : (1, Hp) f32   cell state, carried across chunks
      hall_sc   : (T, Hp) f32   per-step hidden states (for batched projection)
      xg_sc     : (T, 4Hp) f32  chunk input-gate pre-activations
    """
    T = x_ref.shape[0]
    Hp = wcomb_ref.shape[0]
    mdt = wcomb_ref.dtype

    @pl.when(pl.program_id(0) == 0)
    def _():
        h_sc[...] = jnp.zeros_like(h_sc)
        c_sc[...] = jnp.zeros_like(c_sc)

    # Chunk input projection (one lane-dense MXU call): (T,I)@(I,4Hp) -> (T,4Hp)
    xg_sc[...] = (
        jnp.dot(x_ref[...], wih_t_ref[...], preferred_element_type=jnp.float32)
        + b_ref[...]
    )

    # Short bounded unroll; h / c live in vregs only for the chunk.
    h = h_sc[...]                                        # (1, Hp) f32
    c = c_sc[...]                                        # (1, Hp) f32
    for t in range(T):
        gates = xg_sc[pl.ds(t, 1), :] + jnp.dot(
            h.astype(mdt), wcomb_ref[...], preferred_element_type=jnp.float32)
        # Gate order after the prep-time reorder: [i | f | o | g]
        sig = jax.nn.sigmoid(gates[:, :3 * Hp])          # one EUP dispatch
        i_g = sig[:, 0 * Hp:1 * Hp]
        f_g = sig[:, 1 * Hp:2 * Hp]
        o_g = sig[:, 2 * Hp:3 * Hp]
        g_g = jnp.tanh(gates[:, 3 * Hp:])                # one EUP dispatch
        c = f_g * c + i_g * g_g                          # (1, Hp)
        h = o_g * jnp.tanh(c)                            # (1, Hp)
        hall_sc[pl.ds(t, 1), :] = h                      # one vst, off the chain

    h_sc[...] = h                                        # carry to next chunk
    c_sc[...] = c

    # Batched output projection for the whole chunk: (T,Hp)@(Hp,Ppad).
    ys = jnp.dot(hall_sc[...].astype(mdt), whr_t_ref[...],
                 preferred_element_type=jnp.float32)
    if p_real < ys.shape[1]:                             # exclude padded lanes
        lane = lax.broadcasted_iota(jnp.int32, ys.shape, 1)
        ys = jnp.where(lane < p_real, ys, jnp.float32(-1e30))

    # LogSoftmax over the output-feature axis, single lane-dense store.
    # TODO(synk): PyTorch casts to float64 before the softmax; TPU has no
    # native f64, so the log-softmax is computed in float32 here.
    m = jnp.max(ys, axis=1, keepdims=True)
    z = ys - m
    lse = jnp.log(jnp.sum(jnp.exp(z), axis=1, keepdims=True))
    out_ref[...] = z - lse


@partial(jax.jit, static_argnames=("matmul_dtype",))
def rnn_forward(x, params, matmul_dtype=jnp.float32):
    """Pallas forward pass. x: (seq_len, input_size) float32."""
    w_ih, w_hh, b_ih, b_hh, w_hr = params
    L, I = x.shape
    H4 = w_ih.shape[0]
    H = H4 // 4
    P = w_hr.shape[0]

    Hp = _round_up(H, 32)          # 4*Hp multiple of 128, Hp multiple of 8
    H4p = 4 * Hp
    Ppad = _round_up(P, 128)       # lane-dense output -> unmasked vst
    T = T_CHUNK
    Lp = _round_up(max(L, T), T)
    n_chunks = Lp // T

    def reorder_pad(w):
        """PyTorch gate-row order (i,f,g,o) -> (i,f,o,g); pad each gate H->Hp."""
        i_, f_, g_, o_ = w[0:H], w[H:2 * H], w[2 * H:3 * H], w[3 * H:4 * H]

        def pad(blk):
            if Hp == H:
                return blk
            cfg = [(0, Hp - H)] + [(0, 0)] * (blk.ndim - 1)
            return jnp.pad(blk, cfg)

        return jnp.concatenate([pad(i_), pad(f_), pad(o_), pad(g_)], axis=0)

    wih_t = reorder_pad(w_ih).T.astype(matmul_dtype)              # (I, 4Hp)
    whh_t = reorder_pad(w_hh).T                                   # (P, 4Hp) f32
    whr_t_h = jnp.pad(w_hr.T, ((0, Hp - H), (0, 0)))              # (Hp, P) f32
    wcomb = (whr_t_h @ whh_t).astype(matmul_dtype)                # (Hp, 4Hp)
    whr_t = jnp.pad(whr_t_h, ((0, 0), (0, Ppad - P))).astype(matmul_dtype)
    bias = reorder_pad(b_ih + b_hh).reshape(1, H4p)               # (1, 4Hp) f32
    x_p = jnp.pad(x, ((0, Lp - L), (0, 0))).astype(matmul_dtype)  # (Lp, I)

    # Generation-aware VMEM budget: chunked working set + double-buffering
    # headroom, capped at ~80% of this chip's physical VMEM.
    mbs = jnp.dtype(matmul_dtype).itemsize
    est = (2 * T * I * mbs
           + 2 * (wih_t.size + wcomb.size + whr_t.size) * mbs
           + 2 * bias.size * 4
           + 2 * T * Ppad * 4
           + (2 * Hp + T * Hp + T * H4p) * 4)
    vmem_limit = int(min(max(4 * est, 16 << 20), int(0.8 * _VMEM_CAP)))

    out_padded = pl.pallas_call(
        partial(_lstm_chunk_kernel, p_real=P),
        out_shape=jax.ShapeDtypeStruct((Lp, Ppad), jnp.float32),
        grid=(n_chunks,),
        in_specs=[
            pl.BlockSpec((T, I), lambda t: (t, 0)),      # x: streamed per chunk
            pl.BlockSpec((I, H4p), lambda t: (0, 0)),    # W_ih^T   (resident)
            pl.BlockSpec((Hp, H4p), lambda t: (0, 0)),   # W_comb   (resident)
            pl.BlockSpec((1, H4p), lambda t: (0, 0)),    # bias     (resident)
            pl.BlockSpec((Hp, Ppad), lambda t: (0, 0)),  # W_hr^T   (resident)
        ],
        out_specs=pl.BlockSpec((T, Ppad), lambda t: (t, 0)),
        scratch_shapes=[
            pltpu.VMEM((1, Hp), jnp.float32),    # h carry (across chunks)
            pltpu.VMEM((1, Hp), jnp.float32),    # c carry (across chunks)
            pltpu.VMEM((T, Hp), jnp.float32),    # per-step hidden states
            pltpu.VMEM((T, H4p), jnp.float32),   # chunk gate pre-activations
        ],
        compiler_params=pltpu.CompilerParams(
            dimension_semantics=("arbitrary",),          # sequential recurrence
            vmem_limit_bytes=vmem_limit,
        ),
    )(x_p, wih_t, wcomb, bias, whr_t)

    return out_padded[:L, :P]


def rnn_reference(x, params):
    """Pure-JAX reference mirroring torch.nn.LSTM(proj_size>0) + LogSoftmax."""
    w_ih, w_hh, b_ih, b_hh, w_hr = params
    H = w_ih.shape[0] // 4
    P = w_hr.shape[0]

    def step(carry, xt):
        h, c = carry
        gates = xt @ w_ih.T + h @ w_hh.T + b_ih + b_hh
        i = jax.nn.sigmoid(gates[0 * H:1 * H])
        f = jax.nn.sigmoid(gates[1 * H:2 * H])
        g = jnp.tanh(gates[2 * H:3 * H])
        o = jax.nn.sigmoid(gates[3 * H:4 * H])
        c = f * c + i * g
        h = (o * jnp.tanh(c)) @ w_hr.T
        return (h, c), h

    init = (jnp.zeros((P,), jnp.float32), jnp.zeros((H,), jnp.float32))
    _, ys = lax.scan(step, init, x)
    return jax.nn.log_softmax(ys, axis=1)


def init_params(key, input_size, hidden_size, output_size):
    """Deterministic init matching nn.LSTM parameter shapes (proj_size>0)."""
    k = hidden_size ** -0.5
    ks = jax.random.split(key, 5)
    w_ih = jax.random.uniform(ks[0], (4 * hidden_size, input_size), jnp.float32, -k, k)
    w_hh = jax.random.uniform(ks[1], (4 * hidden_size, output_size), jnp.float32, -k, k)
    b_ih = jax.random.uniform(ks[2], (4 * hidden_size,), jnp.float32, -k, k)
    b_hh = jax.random.uniform(ks[3], (4 * hidden_size,), jnp.float32, -k, k)
    w_hr = jax.random.uniform(ks[4], (output_size, hidden_size), jnp.float32, -k, k)
    return w_ih, w_hh, b_ih, b_hh, w_hr


if __name__ == "__main__":
    SEQ_LEN, INPUT_SIZE, HIDDEN_SIZE, OUTPUT_SIZE = 8, 16, 32, 8

    key = jax.random.PRNGKey(0)
    kx, kp = jax.random.split(key)
    x = jax.random.normal(kx, (SEQ_LEN, INPUT_SIZE), jnp.float32)
    params = init_params(kp, INPUT_SIZE, HIDDEN_SIZE, OUTPUT_SIZE)

    ref = jax.block_until_ready(rnn_reference(x, params))

    # Default f32 matmuls: matches the module's numerics.
    out = jax.block_until_ready(rnn_forward(x, params))
    assert out.shape == (SEQ_LEN, OUTPUT_SIZE), out.shape
    assert jnp.all(jnp.isfinite(out))
    assert jnp.allclose(out, ref, atol=1e-4, rtol=1e-4), \
        f"max abs err = {jnp.max(jnp.abs(out - ref))}"

    # bf16 matmul operands (f32 accumulation / recurrence): perf path on
    # v5e/v6e/v7x MXUs; looser tolerance because the operands are quantized.
    out_bf16 = jax.block_until_ready(
        rnn_forward(x, params, matmul_dtype=jnp.bfloat16))
    assert out_bf16.shape == (SEQ_LEN, OUTPUT_SIZE), out_bf16.shape
    assert jnp.all(jnp.isfinite(out_bf16))
    assert jnp.allclose(out_bf16, ref, atol=5e-2, rtol=5e-2), \
        f"max abs err (bf16) = {jnp.max(jnp.abs(out_bf16 - ref))}"

    print("KERNEL_OK")
</pallas_src>

<mosaic_0001>
module attributes {stable_mosaic.version = 11 : i64} {
  func.func @_lstm_chunk_kernel(%arg0: i32, %arg1: memref<8x16xf32, #tpu.memory_space<vmem>>, %arg2: memref<16x128xf32, #tpu.memory_space<vmem>>, %arg3: memref<32x128xf32, #tpu.memory_space<vmem>>, %arg4: memref<1x128xf32, #tpu.memory_space<vmem>>, %arg5: memref<32x128xf32, #tpu.memory_space<vmem>>, %arg6: memref<8x128xf32, #tpu.memory_space<vmem>>, %arg7: memref<1x32xf32, #tpu.memory_space<vmem>>, %arg8: memref<1x32xf32, #tpu.memory_space<vmem>>, %arg9: memref<8x32xf32, #tpu.memory_space<vmem>>, %arg10: memref<8x128xf32, #tpu.memory_space<vmem>>) attributes {dimension_semantics = [#tpu.dimension_semantics<arbitrary>], iteration_bounds = array<i64: 1>, scalar_prefetch = 0 : i64, scratch_operands = 4 : i64, tpu.core_type = #tpu.core_type<tc>, window_params = [{transform_indices = @transform_0, window_bounds = array<i64: 8, 16>}, {pipeline_mode = #tpu.pipeline_mode<synchronous>, transform_indices = @transform_1, window_bounds = array<i64: 16, 128>}, {pipeline_mode = #tpu.pipeline_mode<synchronous>, transform_indices = @transform_2, window_bounds = array<i64: 32, 128>}, {pipeline_mode = #tpu.pipeline_mode<synchronous>, transform_indices = @transform_3, window_bounds = array<i64: 1, 128>}, {pipeline_mode = #tpu.pipeline_mode<synchronous>, transform_indices = @transform_4, window_bounds = array<i64: 32, 128>}, {transform_indices = @transform_5, window_bounds = array<i64: 8, 128>}]} {
    %c0_i32 = arith.constant 0 : i32
    %0 = arith.cmpi eq, %arg0, %c0_i32 : i32
    %1 = arith.extui %0 : i1 to i32
    %c0_i32_0 = arith.constant 0 : i32
    %2 = arith.cmpi ne, %1, %c0_i32_0 : i32
    scf.if %2 {
      %cst_83 = arith.constant 0.000000e+00 : f32
      %201 = vector.broadcast %cst_83 : f32 to vector<1x32xf32>
      %c0_84 = arith.constant 0 : index
      %c0_85 = arith.constant 0 : index
      %202 = vector.load %arg7[%c0_84, %c0_85] : memref<1x32xf32, #tpu.memory_space<vmem>>, vector<1x32xf32>
      tpu.vector_store %arg7[%c0_84, %c0_85], %201 {strides = array<i32>} : memref<1x32xf32, #tpu.memory_space<vmem>>, vector<1x32xf32>,
      %cst_86 = arith.constant 0.000000e+00 : f32
      %203 = vector.broadcast %cst_86 : f32 to vector<1x32xf32>
      %c0_87 = arith.constant 0 : index
      %c0_88 = arith.constant 0 : index
      %204 = vector.load %arg8[%c0_87, %c0_88] : memref<1x32xf32, #tpu.memory_space<vmem>>, vector<1x32xf32>
      tpu.vector_store %arg8[%c0_87, %c0_88], %203 {strides = array<i32>} : memref<1x32xf32, #tpu.memory_space<vmem>>, vector<1x32xf32>,
    } else {
    }
    %c0 = arith.constant 0 : index
    %c0_1 = arith.constant 0 : index
    %3 = vector.load %arg1[%c0, %c0_1] : memref<8x16xf32, #tpu.memory_space<vmem>>, vector<8x16xf32>
    %c0_2 = arith.constant 0 : index
    %c0_3 = arith.constant 0 : index
    %4 = vector.load %arg2[%c0_2, %c0_3] : memref<16x128xf32, #tpu.memory_space<vmem>>, vector<16x128xf32>
    %cst = arith.constant dense<0.000000e+00> : vector<8x128xf32>
    %5 = tpu.matmul %3, %4, %cst {dimension_numbers = #tpu.dot_dimension_numbers<[1], [0], [0], [1], [0, 0, 1, 1], [], []>} : vector<8x16xf32>, vector<16x128xf32>, vector<8x128xf32> -> vector<8x128xf32>
    %c0_4 = arith.constant 0 : index
    %c0_5 = arith.constant 0 : index
    %6 = vector.load %arg4[%c0_4, %c0_5] : memref<1x128xf32, #tpu.memory_space<vmem>>, vector<1x128xf32>
    %7 = vector.broadcast %6 : vector<1x128xf32> to vector<8x128xf32>
    %8 = arith.addf %5, %7 : vector<8x128xf32>
    %c0_6 = arith.constant 0 : index
    %c0_7 = arith.constant 0 : index
    %9 = vector.load %arg10[%c0_6, %c0_7] : memref<8x128xf32, #tpu.memory_space<vmem>>, vector<8x128xf32>
    tpu.vector_store %arg10[%c0_6, %c0_7], %8 {strides = array<i32>} : memref<8x128xf32, #tpu.memory_space<vmem>>, vector<8x128xf32>,
    %c0_8 = arith.constant 0 : index
    %c0_9 = arith.constant 0 : index
    %10 = vector.load %arg7[%c0_8, %c0_9] : memref<1x32xf32, #tpu.memory_space<vmem>>, vector<1x32xf32>
    %c0_10 = arith.constant 0 : index
    %c0_11 = arith.constant 0 : index
    %11 = vector.load %arg8[%c0_10, %c0_11] : memref<1x32xf32, #tpu.memory_space<vmem>>, vector<1x32xf32>
    %c0_12 = arith.constant 0 : index
    %c0_13 = arith.constant 0 : index
    %12 = vector.load %arg10[%c0_12, %c0_13] : memref<8x128xf32, #tpu.memory_space<vmem>>, vector<1x128xf32>
    %c0_14 = arith.constant 0 : index
    %c0_15 = arith.constant 0 : index
    %13 = vector.load %arg3[%c0_14, %c0_15] : memref<32x128xf32, #tpu.memory_space<vmem>>, vector<32x128xf32>
    %cst_16 = arith.constant dense<0.000000e+00> : vector<1x128xf32>
    %14 = tpu.matmul %10, %13, %cst_16 {dimension_numbers = #tpu.dot_dimension_numbers<[1], [0], [0], [1], [0, 0, 1, 1], [], []>} : vector<1x32xf32>, vector<32x128xf32>, vector<1x128xf32> -> vector<1x128xf32>
    %15 = arith.addf %12, %14 : vector<1x128xf32>
    %16 = vector.extract_strided_slice %15 {offsets = [0, 0], sizes = [1, 96], strides = [1, 1]} : vector<1x128xf32> to vector<1x96xf32>
    %17 = arith.negf %16 : vector<1x96xf32>
    %18 = math.exp %17 : vector<1x96xf32>
    %cst_17 = arith.constant 1.000000e+00 : f32
    %19 = vector.broadcast %cst_17 : f32 to vector<1x96xf32>
    %20 = arith.addf %19, %18 : vector<1x96xf32>
    %21 = arith.divf %19, %20 : vector<1x96xf32>
    %22 = vector.extract_strided_slice %21 {offsets = [0, 0], sizes = [1, 32], strides = [1, 1]} : vector<1x96xf32> to vector<1x32xf32>
    %23 = vector.extract_strided_slice %21 {offsets = [0, 32], sizes = [1, 32], strides = [1, 1]} : vector<1x96xf32> to vector<1x32xf32>
    %24 = vector.extract_strided_slice %21 {offsets = [0, 64], sizes = [1, 32], strides = [1, 1]} : vector<1x96xf32> to vector<1x32xf32>
    %25 = vector.extract_strided_slice %15 {offsets = [0, 96], sizes = [1, 32], strides = [1, 1]} : vector<1x128xf32> to vector<1x32xf32>
    %26 = math.tanh %25 : vector<1x32xf32>
    %27 = arith.mulf %23, %11 : vector<1x32xf32>
    %28 = arith.mulf %22, %26 : vector<1x32xf32>
    %29 = arith.addf %27, %28 : vector<1x32xf32>
    %30 = math.tanh %29 : vector<1x32xf32>
    %31 = arith.mulf %24, %30 : vector<1x32xf32>
    %c0_18 = arith.constant 0 : index
    %c0_19 = arith.constant 0 : index
    %32 = vector.load %arg9[%c0_18, %c0_19] : memref<8x32xf32, #tpu.memory_space<vmem>>, vector<1x32xf32>
    tpu.vector_store %arg9[%c0_18, %c0_19], %31 {strides = array<i32>} : memref<8x32xf32, #tpu.memory_space<vmem>>, vector<1x32xf32>,
    %c1 = arith.constant 1 : index
    %c0_20 = arith.constant 0 : index
    %33 = vector.load %arg10[%c1, %c0_20] : memref<8x128xf32, #tpu.memory_space<vmem>>, vector<1x128xf32>
    %c0_21 = arith.constant 0 : index
    %c0_22 = arith.constant 0 : index
    %34 = vector.load %arg3[%c0_21, %c0_22] : memref<32x128xf32, #tpu.memory_space<vmem>>, vector<32x128xf32>
    %cst_23 = arith.constant dense<0.000000e+00> : vector<1x128xf32>
    %35 = tpu.matmul %31, %34, %cst_23 {dimension_numbers = #tpu.dot_dimension_numbers<[1], [0], [0], [1], [0, 0, 1, 1], [], []>} : vector<1x32xf32>, vector<32x128xf32>, vector<1x128xf32> -> vector<1x128xf32>
    %36 = arith.addf %33, %35 : vector<1x128xf32>
    %37 = vector.extract_strided_slice %36 {offsets = [0, 0], sizes = [1, 96], strides = [1, 1]} : vector<1x128xf32> to vector<1x96xf32>
    %38 = arith.negf %37 : vector<1x96xf32>
    %39 = math.exp %38 : vector<1x96xf32>
    %cst_24 = arith.constant 1.000000e+00 : f32
    %40 = vector.broadcast %cst_24 : f32 to vector<1x96xf32>
    %41 = arith.addf %40, %39 : vector<1x96xf32>
    %42 = arith.divf %40, %41 : vector<1x96xf32>
    %43 = vector.extract_strided_slice %42 {offsets = [0, 0], sizes = [1, 32], strides = [1, 1]} : vector<1x96xf32> to vector<1x32xf32>
    %44 = vector.extract_strided_slice %42 {offsets = [0, 32], sizes = [1, 32], strides = [1, 1]} : vector<1x96xf32> to vector<1x32xf32>
    %45 = vector.extract_strided_slice %42 {offsets = [0, 64], sizes = [1, 32], strides = [1, 1]} : vector<1x96xf32> to vector<1x32xf32>
    %46 = vector.extract_strided_slice %36 {offsets = [0, 96], sizes = [1, 32], strides = [1, 1]} : vector<1x128xf32> to vector<1x32xf32>
    %47 = math.tanh %46 : vector<1x32xf32>
    %48 = arith.mulf %44, %29 : vector<1x32xf32>
    %49 = arith.mulf %43, %47 : vector<1x32xf32>
    %50 = arith.addf %48, %49 : vector<1x32xf32>
    %51 = math.tanh %50 : vector<1x32xf32>
    %52 = arith.mulf %45, %51 : vector<1x32xf32>
    %c1_25 = arith.constant 1 : index
    %c0_26 = arith.constant 0 : index
    %53 = vector.load %arg9[%c1_25, %c0_26] : memref<8x32xf32, #tpu.memory_space<vmem>>, vector<1x32xf32>
    tpu.vector_store %arg9[%c1_25, %c0_26], %52 {strides = array<i32>} : memref<8x32xf32, #tpu.memory_space<vmem>>, vector<1x32xf32>,
    %c2 = arith.constant 2 : index
    %c0_27 = arith.constant 0 : index
    %54 = vector.load %arg10[%c2, %c0_27] : memref<8x128xf32, #tpu.memory_space<vmem>>, vector<1x128xf32>
    %c0_28 = arith.constant 0 : index
    %c0_29 = arith.constant 0 : index
    %55 = vector.load %arg3[%c0_28, %c0_29] : memref<32x128xf32, #tpu.memory_space<vmem>>, vector<32x128xf32>
    %cst_30 = arith.constant dense<0.000000e+00> : vector<1x128xf32>
    %56 = tpu.matmul %52, %55, %cst_30 {dimension_numbers = #tpu.dot_dimension_numbers<[1], [0], [0], [1], [0, 0, 1, 1], [], []>} : vector<1x32xf32>, vector<32x128xf32>, vector<1x128xf32> -> vector<1x128xf32>
    %57 = arith.addf %54, %56 : vector<1x128xf32>
    %58 = vector.extract_strided_slice %57 {offsets = [0, 0], sizes = [1, 96], strides = [1, 1]} : vector<1x128xf32> to vector<1x96xf32>
    %59 = arith.negf %58 : vector<1x96xf32>
    %60 = math.exp %59 : vector<1x96xf32>
    %cst_31 = arith.constant 1.000000e+00 : f32
    %61 = vector.broadcast %cst_31 : f32 to vector<1x96xf32>
    %62 = arith.addf %61, %60 : vector<1x96xf32>
    %63 = arith.divf %61, %62 : vector<1x96xf32>
    %64 = vector.extract_strided_slice %63 {offsets = [0, 0], sizes = [1, 32], strides = [1, 1]} : vector<1x96xf32> to vector<1x32xf32>
    %65 = vector.extract_strided_slice %63 {offsets = [0, 32], sizes = [1, 32], strides = [1, 1]} : vector<1x96xf32> to vector<1x32xf32>
    %66 = vector.extract_strided_slice %63 {offsets = [0, 64], sizes = [1, 32], strides = [1, 1]} : vector<1x96xf32> to vector<1x32xf32>
    %67 = vector.extract_strided_slice %57 {offsets = [0, 96], sizes = [1, 32], strides = [1, 1]} : vector<1x128xf32> to vector<1x32xf32>
    %68 = math.tanh %67 : vector<1x32xf32>
    %69 = arith.mulf %65, %50 : vector<1x32xf32>
    %70 = arith.mulf %64, %68 : vector<1x32xf32>
    %71 = arith.addf %69, %70 : vector<1x32xf32>
    %72 = math.tanh %71 : vector<1x32xf32>
    %73 = arith.mulf %66, %72 : vector<1x32xf32>
    %c2_32 = arith.constant 2 : index
    %c0_33 = arith.constant 0 : index
    %74 = vector.load %arg9[%c2_32, %c0_33] : memref<8x32xf32, #tpu.memory_space<vmem>>, vector<1x32xf32>
    tpu.vector_store %arg9[%c2_32, %c0_33], %73 {strides = array<i32>} : memref<8x32xf32, #tpu.memory_space<vmem>>, vector<1x32xf32>,
    %c3 = arith.constant 3 : index
    %c0_34 = arith.constant 0 : index
    %75 = vector.load %arg10[%c3, %c0_34] : memref<8x128xf32, #tpu.memory_space<vmem>>, vector<1x128xf32>
    %c0_35 = arith.constant 0 : index
    %c0_36 = arith.constant 0 : index
    %76 = vector.load %arg3[%c0_35, %c0_36] : memref<32x128xf32, #tpu.memory_space<vmem>>, vector<32x128xf32>
    %cst_37 = arith.constant dense<0.000000e+00> : vector<1x128xf32>
    %77 = tpu.matmul %73, %76, %cst_37 {dimension_numbers = #tpu.dot_dimension_numbers<[1], [0], [0], [1], [0, 0, 1, 1], [], []>} : vector<1x32xf32>, vector<32x128xf32>, vector<1x128xf32> -> vector<1x128xf32>
    %78 = arith.addf %75, %77 : vector<1x128xf32>
    %79 = vector.extract_strided_slice %78 {offsets = [0, 0], sizes = [1, 96], strides = [1, 1]} : vector<1x128xf32> to vector<1x96xf32>
    %80 = arith.negf %79 : vector<1x96xf32>
    %81 = math.exp %80 : vector<1x96xf32>
    %cst_38 = arith.constant 1.000000e+00 : f32
    %82 = vector.broadcast %cst_38 : f32 to vector<1x96xf32>
    %83 = arith.addf %82, %81 : vector<1x96xf32>
    %84 = arith.divf %82, %83 : vector<1x96xf32>
    %85 = vector.extract_strided_slice %84 {offsets = [0, 0], sizes = [1, 32], strides = [1, 1]} : vector<1x96xf32> to vector<1x32xf32>
    %86 = vector.extract_strided_slice %84 {offsets = [0, 32], sizes = [1, 32], strides = [1, 1]} : vector<1x96xf32> to vector<1x32xf32>
    %87 = vector.extract_strided_slice %84 {offsets = [0, 64], sizes = [1, 32], strides = [1, 1]} : vector<1x96xf32> to vector<1x32xf32>
    %88 = vector.extract_strided_slice %78 {offsets = [0, 96], sizes = [1, 32], strides = [1, 1]} : vector<1x128xf32> to vector<1x32xf32>
    %89 = math.tanh %88 : vector<1x32xf32>
    %90 = arith.mulf %86, %71 : vector<1x32xf32>
    %91 = arith.mulf %85, %89 : vector<1x32xf32>
    %92 = arith.addf %90, %91 : vector<1x32xf32>
    %93 = math.tanh %92 : vector<1x32xf32>
    %94 = arith.mulf %87, %93 : vector<1x32xf32>
    %c3_39 = arith.constant 3 : index
    %c0_40 = arith.constant 0 : index
    %95 = vector.load %arg9[%c3_39, %c0_40] : memref<8x32xf32, #tpu.memory_space<vmem>>, vector<1x32xf32>
    tpu.vector_store %arg9[%c3_39, %c0_40], %94 {strides = array<i32>} : memref<8x32xf32, #tpu.memory_space<vmem>>, vector<1x32xf32>,
    %c4 = arith.constant 4 : index
    %c0_41 = arith.constant 0 : index
    %96 = vector.load %arg10[%c4, %c0_41] : memref<8x128xf32, #tpu.memory_space<vmem>>, vector<1x128xf32>
    %c0_42 = arith.constant 0 : index
    %c0_43 = arith.constant 0 : index
    %97 = vector.load %arg3[%c0_42, %c0_43] : memref<32x128xf32, #tpu.memory_space<vmem>>, vector<32x128xf32>
    %cst_44 = arith.constant dense<0.000000e+00> : vector<1x128xf32>
    %98 = tpu.matmul %94, %97, %cst_44 {dimension_numbers = #tpu.dot_dimension_numbers<[1], [0], [0], [1], [0, 0, 1, 1], [], []>} : vector<1x32xf32>, vector<32x128xf32>, vector<1x128xf32> -> vector<1x128xf32>
    %99 = arith.addf %96, %98 : vector<1x128xf32>
    %100 = vector.extract_strided_slice %99 {offsets = [0, 0], sizes = [1, 96], strides = [1, 1]} : vector<1x128xf32> to vector<1x96xf32>
    %101 = arith.negf %100 : vector<1x96xf32>
    %102 = math.exp %101 : vector<1x96xf32>
    %cst_45 = arith.constant 1.000000e+00 : f32
    %103 = vector.broadcast %cst_45 : f32 to vector<1x96xf32>
    %104 = arith.addf %103, %102 : vector<1x96xf32>
    %105 = arith.divf %103, %104 : vector<1x96xf32>
    %106 = vector.extract_strided_slice %105 {offsets = [0, 0], sizes = [1, 32], strides = [1, 1]} : vector<1x96xf32> to vector<1x32xf32>
    %107 = vector.extract_strided_slice %105 {offsets = [0, 32], sizes = [1, 32], strides = [1, 1]} : vector<1x96xf32> to vector<1x32xf32>
    %108 = vector.extract_strided_slice %105 {offsets = [0, 64], sizes = [1, 32], strides = [1, 1]} : vector<1x96xf32> to vector<1x32xf32>
    %109 = vector.extract_strided_slice %99 {offsets = [0, 96], sizes = [1, 32], strides = [1, 1]} : vector<1x128xf32> to vector<1x32xf32>
    %110 = math.tanh %109 : vector<1x32xf32>
    %111 = arith.mulf %107, %92 : vector<1x32xf32>
    %112 = arith.mulf %106, %110 : vector<1x32xf32>
    %113 = arith.addf %111, %112 : vector<1x32xf32>
    %114 = math.tanh %113 : vector<1x32xf32>
    %115 = arith.mulf %108, %114 : vector<1x32xf32>
    %c4_46 = arith.constant 4 : index
    %c0_47 = arith.constant 0 : index
    %116 = vector.load %arg9[%c4_46, %c0_47] : memref<8x32xf32, #tpu.memory_space<vmem>>, vector<1x32xf32>
    tpu.vector_store %arg9[%c4_46, %c0_47], %115 {strides = array<i32>} : memref<8x32xf32, #tpu.memory_space<vmem>>, vector<1x32xf32>,
    %c5 = arith.constant 5 : index
    %c0_48 = arith.constant 0 : index
    %117 = vector.load %arg10[%c5, %c0_48] : memref<8x128xf32, #tpu.memory_space<vmem>>, vector<1x128xf32>
    %c0_49 = arith.constant 0 : index
    %c0_50 = arith.constant 0 : index
    %118 = vector.load %arg3[%c0_49, %c0_50] : memref<32x128xf32, #tpu.memory_space<vmem>>, vector<32x128xf32>
    %cst_51 = arith.constant dense<0.000000e+00> : vector<1x128xf32>
    %119 = tpu.matmul %115, %118, %cst_51 {dimension_numbers = #tpu.dot_dimension_numbers<[1], [0], [0], [1], [0, 0, 1, 1], [], []>} : vector<1x32xf32>, vector<32x128xf32>, vector<1x128xf32> -> vector<1x128xf32>
    %120 = arith.addf %117, %119 : vector<1x128xf32>
    %121 = vector.extract_strided_slice %120 {offsets = [0, 0], sizes = [1, 96], strides = [1, 1]} : vector<1x128xf32> to vector<1x96xf32>
    %122 = arith.negf %121 : vector<1x96xf32>
    %123 = math.exp %122 : vector<1x96xf32>
    %cst_52 = arith.constant 1.000000e+00 : f32
    %124 = vector.broadcast %cst_52 : f32 to vector<1x96xf32>
    %125 = arith.addf %124, %123 : vector<1x96xf32>
    %126 = arith.divf %124, %125 : vector<1x96xf32>
    %127 = vector.extract_strided_slice %126 {offsets = [0, 0], sizes = [1, 32], strides = [1, 1]} : vector<1x96xf32> to vector<1x32xf32>
    %128 = vector.extract_strided_slice %126 {offsets = [0, 32], sizes = [1, 32], strides = [1, 1]} : vector<1x96xf32> to vector<1x32xf32>
    %129 = vector.extract_strided_slice %126 {offsets = [0, 64], sizes = [1, 32], strides = [1, 1]} : vector<1x96xf32> to vector<1x32xf32>
    %130 = vector.extract_strided_slice %120 {offsets = [0, 96], sizes = [1, 32], strides = [1, 1]} : vector<1x128xf32> to vector<1x32xf32>
    %131 = math.tanh %130 : vector<1x32xf32>
    %132 = arith.mulf %128, %113 : vector<1x32xf32>
    %133 = arith.mulf %127, %131 : vector<1x32xf32>
    %134 = arith.addf %132, %133 : vector<1x32xf32>
    %135 = math.tanh %134 : vector<1x32xf32>
    %136 = arith.mulf %129, %135 : vector<1x32xf32>
    %c5_53 = arith.constant 5 : index
    %c0_54 = arith.constant 0 : index
    %137 = vector.load %arg9[%c5_53, %c0_54] : memref<8x32xf32, #tpu.memory_space<vmem>>, vector<1x32xf32>
    tpu.vector_store %arg9[%c5_53, %c0_54], %136 {strides = array<i32>} : memref<8x32xf32, #tpu.memory_space<vmem>>, vector<1x32xf32>,
    %c6 = arith.constant 6 : index
    %c0_55 = arith.constant 0 : index
    %138 = vector.load %arg10[%c6, %c0_55] : memref<8x128xf32, #tpu.memory_space<vmem>>, vector<1x128xf32>
    %c0_56 = arith.constant 0 : index
    %c0_57 = arith.constant 0 : index
    %139 = vector.load %arg3[%c0_56, %c0_57] : memref<32x128xf32, #tpu.memory_space<vmem>>, vector<32x128xf32>
    %cst_58 = arith.constant dense<0.000000e+00> : vector<1x128xf32>
    %140 = tpu.matmul %136, %139, %cst_58 {dimension_numbers = #tpu.dot_dimension_numbers<[1], [0], [0], [1], [0, 0, 1, 1], [], []>} : vector<1x32xf32>, vector<32x128xf32>, vector<1x128xf32> -> vector<1x128xf32>
    %141 = arith.addf %138, %140 : vector<1x128xf32>
    %142 = vector.extract_strided_slice %141 {offsets = [0, 0], sizes = [1, 96], strides = [1, 1]} : vector<1x128xf32> to vector<1x96xf32>
    %143 = arith.negf %142 : vector<1x96xf32>
    %144 = math.exp %143 : vector<1x96xf32>
    %cst_59 = arith.constant 1.000000e+00 : f32
    %145 = vector.broadcast %cst_59 : f32 to vector<1x96xf32>
    %146 = arith.addf %145, %144 : vector<1x96xf32>
    %147 = arith.divf %145, %146 : vector<1x96xf32>
    %148 = vector.extract_strided_slice %147 {offsets = [0, 0], sizes = [1, 32], strides = [1, 1]} : vector<1x96xf32> to vector<1x32xf32>
    %149 = vector.extract_strided_slice %147 {offsets = [0, 32], sizes = [1, 32], strides = [1, 1]} : vector<1x96xf32> to vector<1x32xf32>
    %150 = vector.extract_strided_slice %147 {offsets = [0, 64], sizes = [1, 32], strides = [1, 1]} : vector<1x96xf32> to vector<1x32xf32>
    %151 = vector.extract_strided_slice %141 {offsets = [0, 96], sizes = [1, 32], strides = [1, 1]} : vector<1x128xf32> to vector<1x32xf32>
    %152 = math.tanh %151 : vector<1x32xf32>
    %153 = arith.mulf %149, %134 : vector<1x32xf32>
    %154 = arith.mulf %148, %152 : vector<1x32xf32>
    %155 = arith.addf %153, %154 : vector<1x32xf32>
    %156 = math.tanh %155 : vector<1x32xf32>
    %157 = arith.mulf %150, %156 : vector<1x32xf32>
    %c6_60 = arith.constant 6 : index
    %c0_61 = arith.constant 0 : index
    %158 = vector.load %arg9[%c6_60, %c0_61] : memref<8x32xf32, #tpu.memory_space<vmem>>, vector<1x32xf32>
    tpu.vector_store %arg9[%c6_60, %c0_61], %157 {strides = array<i32>} : memref<8x32xf32, #tpu.memory_space<vmem>>, vector<1x32xf32>,
    %c7 = arith.constant 7 : index
    %c0_62 = arith.constant 0 : index
    %159 = vector.load %arg10[%c7, %c0_62] : memref<8x128xf32, #tpu.memory_space<vmem>>, vector<1x128xf32>
    %c0_63 = arith.constant 0 : index
    %c0_64 = arith.constant 0 : index
    %160 = vector.load %arg3[%c0_63, %c0_64] : memref<32x128xf32, #tpu.memory_space<vmem>>, vector<32x128xf32>
    %cst_65 = arith.constant dense<0.000000e+00> : vector<1x128xf32>
    %161 = tpu.matmul %157, %160, %cst_65 {dimension_numbers = #tpu.dot_dimension_numbers<[1], [0], [0], [1], [0, 0, 1, 1], [], []>} : vector<1x32xf32>, vector<32x128xf32>, vector<1x128xf32> -> vector<1x128xf32>
    %162 = arith.addf %159, %161 : vector<1x128xf32>
    %163 = vector.extract_strided_slice %162 {offsets = [0, 0], sizes = [1, 96], strides = [1, 1]} : vector<1x128xf32> to vector<1x96xf32>
    %164 = arith.negf %163 : vector<1x96xf32>
    %165 = math.exp %164 : vector<1x96xf32>
    %cst_66 = arith.constant 1.000000e+00 : f32
    %166 = vector.broadcast %cst_66 : f32 to vector<1x96xf32>
    %167 = arith.addf %166, %165 : vector<1x96xf32>
    %168 = arith.divf %166, %167 : vector<1x96xf32>
    %169 = vector.extract_strided_slice %168 {offsets = [0, 0], sizes = [1, 32], strides = [1, 1]} : vector<1x96xf32> to vector<1x32xf32>
    %170 = vector.extract_strided_slice %168 {offsets = [0, 32], sizes = [1, 32], strides = [1, 1]} : vector<1x96xf32> to vector<1x32xf32>
    %171 = vector.extract_strided_slice %168 {offsets = [0, 64], sizes = [1, 32], strides = [1, 1]} : vector<1x96xf32> to vector<1x32xf32>
    %172 = vector.extract_strided_slice %162 {offsets = [0, 96], sizes = [1, 32], strides = [1, 1]} : vector<1x128xf32> to vector<1x32xf32>
    %173 = math.tanh %172 : vector<1x32xf32>
    %174 = arith.mulf %170, %155 : vector<1x32xf32>
    %175 = arith.mulf %169, %173 : vector<1x32xf32>
    %176 = arith.addf %174, %175 : vector<1x32xf32>
    %177 = math.tanh %176 : vector<1x32xf32>
    %178 = arith.mulf %171, %177 : vector<1x32xf32>
    %c7_67 = arith.constant 7 : index
    %c0_68 = arith.constant 0 : index
    %179 = vector.load %arg9[%c7_67, %c0_68] : memref<8x32xf32, #tpu.memory_space<vmem>>, vector<1x32xf32>
    tpu.vector_store %arg9[%c7_67, %c0_68], %178 {strides = array<i32>} : memref<8x32xf32, #tpu.memory_space<vmem>>, vector<1x32xf32>,
    %c0_69 = arith.constant 0 : index
    %c0_70 = arith.constant 0 : index
    %180 = vector.load %arg7[%c0_69, %c0_70] : memref<1x32xf32, #tpu.memory_space<vmem>>, vector<1x32xf32>
    tpu.vector_store %arg7[%c0_69, %c0_70], %178 {strides = array<i32>} : memref<1x32xf32, #tpu.memory_space<vmem>>, vector<1x32xf32>,
    %c0_71 = arith.constant 0 : index
    %c0_72 = arith.constant 0 : index
    %181 = vector.load %arg8[%c0_71, %c0_72] : memref<1x32xf32, #tpu.memory_space<vmem>>, vector<1x32xf32>
    tpu.vector_store %arg8[%c0_71, %c0_72], %176 {strides = array<i32>} : memref<1x32xf32, #tpu.memory_space<vmem>>, vector<1x32xf32>,
    %c0_73 = arith.constant 0 : index
    %c0_74 = arith.constant 0 : index
    %182 = vector.load %arg9[%c0_73, %c0_74] : memref<8x32xf32, #tpu.memory_space<vmem>>, vector<8x32xf32>
    %c0_75 = arith.constant 0 : index
    %c0_76 = arith.constant 0 : index
    %183 = vector.load %arg5[%c0_75, %c0_76] : memref<32x128xf32, #tpu.memory_space<vmem>>, vector<32x128xf32>
    %cst_77 = arith.constant dense<0.000000e+00> : vector<8x128xf32>
    %184 = tpu.matmul %182, %183, %cst_77 {dimension_numbers = #tpu.dot_dimension_numbers<[1], [0], [0], [1], [0, 0, 1, 1], [], []>} : vector<8x32xf32>, vector<32x128xf32>, vector<8x128xf32> -> vector<8x128xf32>
    %185 = tpu.iota {dimensions = array<i32: 1>} : vector<8x128xi32>
    %c8_i32 = arith.constant 8 : i32
    %186 = vector.broadcast %c8_i32 : i32 to vector<8x128xi32>
    %187 = arith.cmpi slt, %185, %186 : vector<8x128xi32>
    %cst_78 = arith.constant -1.000000e+30 : f32
    %188 = vector.broadcast %cst_78 : f32 to vector<8x128xf32>
    %189 = arith.select %187, %184, %188 : vector<8x128xi1>, vector<8x128xf32>
    %cst_79 = arith.constant dense<0xFF800000> : vector<8xf32>
    %190 = vector.multi_reduction <maximumf>, %189, %cst_79 [1] : vector<8x128xf32> to vector<8xf32>
    %191 = vector.shape_cast %190 : vector<8xf32> to vector<8x1xf32>
    %192 = vector.broadcast %191 : vector<8x1xf32> to vector<8x128xf32>
    %193 = arith.subf %189, %192 : vector<8x128xf32>
    %194 = math.exp %193 : vector<8x128xf32>
    %cst_80 = arith.constant dense<0.000000e+00> : vector<8xf32>
    %195 = vector.multi_reduction <add>, %194, %cst_80 [1] : vector<8x128xf32> to vector<8xf32>
    %196 = vector.shape_cast %195 : vector<8xf32> to vector<8x1xf32>
    %197 = math.log %196 : vector<8x1xf32>
    %198 = vector.broadcast %197 : vector<8x1xf32> to vector<8x128xf32>
    %199 = arith.subf %193, %198 : vector<8x128xf32>
    %c0_81 = arith.constant 0 : index
    %c0_82 = arith.constant 0 : index
    %200 = vector.load %arg6[%c0_81, %c0_82] : memref<8x128xf32, #tpu.memory_space<vmem>>, vector<8x128xf32>
    tpu.vector_store %arg6[%c0_81, %c0_82], %199 {strides = array<i32>} : memref<8x128xf32, #tpu.memory_space<vmem>>, vector<8x128xf32>,
    return
  }
  func.func @transform_0(%arg0: i32) -> (i32, i32) {
    %c0_i32 = arith.constant 0 : i32
    %c0_i32_0 = arith.constant 0 : i32
    return %arg0, %c0_i32 : i32, i32
  }
  func.func @transform_1(%arg0: i32) -> (i32, i32) {
    %c0_i32 = arith.constant 0 : i32
    %c0_i32_0 = arith.constant 0 : i32
    %c0_i32_1 = arith.constant 0 : i32
    return %c0_i32, %c0_i32_0 : i32, i32
  }
  func.func @transform_2(%arg0: i32) -> (i32, i32) {
    %c0_i32 = arith.constant 0 : i32
    %c0_i32_0 = arith.constant 0 : i32
    %c0_i32_1 = arith.constant 0 : i32
    return %c0_i32, %c0_i32_0 : i32, i32
  }
  func.func @transform_3(%arg0: i32) -> (i32, i32) {
    %c0_i32 = arith.constant 0 : i32
    %c0_i32_0 = arith.constant 0 : i32
    %c0_i32_1 = arith.constant 0 : i32
    return %c0_i32, %c0_i32_0 : i32, i32
  }
  func.func @transform_4(%arg0: i32) -> (i32, i32) {
    %c0_i32 = arith.constant 0 : i32
    %c0_i32_0 = arith.constant 0 : i32
    %c0_i32_1 = arith.constant 0 : i32
    return %c0_i32, %c0_i32_0 : i32, i32
  }
  func.func @transform_5(%arg0: i32) -> (i32, i32) {
    %c0_i32 = arith.constant 0 : i32
    %c0_i32_0 = arith.constant 0 : i32
    return %arg0, %c0_i32 : i32, i32
  }
}

</mosaic_0001>

<bundles_post_ra>
// kernel: rnn_forward.1
= control target key start
LH: loop header
LB: loop body
LE: loop exit
PB: predicated region body
PF: predicated region fallthrough
CT: control target
= control target key end

     0   :  { %vm25_vm0 = vcmask 253952   ;;  %vm35_vm1 = vcmask 130048   ;;  %v814_v5 = vmov 0.0   ;;  %s942_s0 = inlined_call_operand.vmem [shape: f32[8,16], index: 0, kind: input, shape index: {}]   ;;  %s943_s1 = inlined_call_operand.vmem [shape: f32[16,128], index: 1, kind: input, shape index: {}]   ;;  %s944_s2 = inlined_call_operand.vmem [shape: f32[32,128], index: 2, kind: input, shape index: {}]   ;;  %s945_s3 = inlined_call_operand.vmem [shape: f32[1,128], index: 3, kind: input, shape index: {}]   ;;  %s946_s4 = inlined_call_operand.vmem [shape: f32[32,128], index: 4, kind: input, shape index: {}]   ;;  %s947_s5 = inlined_call_operand.hbm [shape: f32[8,128], index: 5, kind: output, shape index: {}]  }
   0x1   :  { %v30_v0 = vld [vmem:[%s943_s1 + $0x8] sm:$0xff]  ;;  %v29_v1 = vld [vmem:[%s943_s1] sm:$0xff]  ;;  %v66_v3 = vld [vmem:[%s944_s2 + $0x18] sm:$0xff]  ;;  %26 = vst.msk [vmem:[#allocation2] sm:$0x1] %vm25_vm0, %v814_v5 }
   0x2   :  { %53 = vmatpush.msra.mxu0 %v30_v0  ;;  %v28_v2 = vld [vmem:[%s942_s0] sm:$0xff]  ;;  %v65_v4 = vld [vmem:[%s944_s2 + $0x10] sm:$0xff]  ;;  %83 = vmatpush.msra.mxu1 %v66_v3  ;;  %27 = vst.msk [vmem:[#allocation3] sm:$0x1] %vm25_vm0, %v814_v5  ;;  %v64_v6 = vld [vmem:[%s944_s2 + $0x8] sm:$0xff] }
   0x3   :  { %159 = vmatpush.msra.mxu2 %v66_v3  ;;  %229 = vmatpush.msra.mxu3 %v66_v3 }
   0x4   :  { %54 = vmatpush.msra.mxu0 %v29_v1 }
   0x5   :  { %10 = vsyncpa [#allocation7], 0  ;;  %695 = vmatmul.msk.f32.vlgmr.msra.gmra.mxu0 %vm35_vm1, %v28_v2  ;;  %84 = vmatpush.msra.mxu1 %v65_v4  ;;  %v63_v7 = vld [vmem:[%s944_s2] sm:$0xff]  ;;  %vm67_vm2 = vcmask 261120   ;;  %s815_s6 = smov 32   ;;  %s817_s7 = smov 96  }
   0x6   :  { %160 = vmatpush.msra.mxu2 %v65_v4  ;;  %230 = vmatpush.msra.mxu3 %v65_v4  ;;  %v718_v9 = vld [vmem:[%s945_s3] ss:$0 sm:$0xff]  ;;  %s816_s3 = smov 64   ;;  %s686_s19 = sshll.u32 %s947_s5, 4  ;;  %s687_s19 = int_to_ptr.hbm [resolvable:$true] %s686_s19 }
   0x7   :  { %85 = vmatpush.msra.mxu1 %v64_v6  ;;  %299 = vmatpush.msrb.mxu0 %v66_v3 }
   0x8   :  { %161 = vmatpush.msra.mxu2 %v64_v6  ;;  %231 = vmatpush.msra.mxu3 %v64_v6  ;;  %v60_v8 = vld [vmem:[#allocation2] sm:$0x1] }
   0x9   :  { %86 = vmatpush.msra.mxu1 %v63_v7  ;;  %300 = vmatpush.msrb.mxu0 %v65_v4  ;;  %v719_v16 = vld [vmem:[#allocation3] ss:$0 sm:$0xff] }
   0xa   :  { %696 = vmatmul.msk.f32.vlgmr.msra.gmra.mxu1 %vm67_vm2, %v60_v8  ;;  %162 = vmatpush.msra.mxu2 %v63_v7 }
   0xb   :  { %232 = vmatpush.msra.mxu3 %v63_v7  ;;  %301 = vmatpush.msrb.mxu0 %v64_v6 }
   0xc   :  { %369 = vmatpush.msrb.mxu1 %v66_v3  ;;  %439 = vmatpush.msrb.mxu2 %v66_v3 }
   0xd   :  { %302 = vmatpush.msrb.mxu0 %v63_v7  ;;  %509 = vmatpush.msrb.mxu3 %v66_v3 }
   0xe   :  { %370 = vmatpush.msrb.mxu1 %v65_v4  ;;  %440 = vmatpush.msrb.mxu2 %v65_v4 }
   0xf   :  { %510 = vmatpush.msrb.mxu3 %v65_v4  ;;  %579 = vmatpush.msra.mxu0 %v66_v3 }
  0x10   :  { %371 = vmatpush.msrb.mxu1 %v64_v6  ;;  %441 = vmatpush.msrb.mxu2 %v64_v6 }
  0x11   :  { %511 = vmatpush.msrb.mxu3 %v64_v6  ;;  %580 = vmatpush.msra.mxu0 %v65_v4 }
  0x12   :  { %372 = vmatpush.msrb.mxu1 %v63_v7  ;;  %442 = vmatpush.msrb.mxu2 %v63_v7 }
  0x13   :  { %512 = vmatpush.msrb.mxu3 %v63_v7  ;;  %581 = vmatpush.msra.mxu0 %v64_v6 }
  0x15   :  { %582 = vmatpush.msra.mxu0 %v63_v7 }
  0x82   :  { %v56_v10 = vpop.f32.mrf.mxu0 }
  0x83   :  { %v57_v11 = vadd.f32 %v718_v9, %v56_v10 }
  0x85   :  { %59 = vst [vmem:[#allocation5] sm:$0xff] %v57_v11 }
  0x87   :  { %v88_v12 = vpop.f32.mrf.mxu1 }
  0x8c   :  { %v62_v13 = vld [vmem:[#allocation5] sm:$0x1]  ;;  %v140_v40 = vld [vmem:[#allocation5 + $0x1] sm:$0x1]  ;;  %v210_v2 = vld [vmem:[#allocation5 + $0x2] sm:$0x1] }
  0x8d   :  { %v91_v14 = vadd.f32 %v88_v12, %v62_v13 }
  0x8f   :  { %720 = vtanh.f32 %v91_v14  ;;  %v697_v17 = vmul.f32 -1.442695, %v91_v14 }
  0x91   :  { %722 = vpow2.f32 %v697_v17 }
  0x95   :  { %v721_v15 = vpop.eup %720 }
  0x96   :  { %119 = vrot.lane.b32.xlu0 %v721_v15, %s815_s6 }
  0x97   :  { %v723_v18 = vpop.eup %722 }
  0x98   :  { %v95_v19 = vadd.f32 1.0, %v723_v18 }
  0x9a   :  { %724 = vrcp.f32 %v95_v19  ;;  %v107_v25 = vand.u32 2147483648, %v95_v19  ;;  %vm101_vm4 = vweird.f32 %v95_v19  ;;  %v105_v26 = vand.u32 2147483647, %v95_v19 }
  0x9c   :  { %v108_v28 = vor.u32 1.1754944e-38, %v107_v25  ;;  %vm106_vm6 = vcmp.eq.f32.partialorder %v105_v26, 8.507059e+37 }
  0x9e   :  { %114 = vrot.lane.b32.xlu0 %v719_v16, %s815_s6 }
  0xa0   :  { %v725_v20 = vpop.eup %724 }
  0xa1   :  { %v97_v21 = vmul.f32 %v725_v20, %v95_v19  ;;  %vm102_vm3 = vweird.f32 %v725_v20 }
  0xa2   :  { %vm103_vm5 = vmor %vm101_vm4, %vm102_vm3 }
  0xa3   :  { %v98_v22 = vsub.f32 1.0, %v97_v21 }
  0xa5   :  { %v99_v23 = vmul.f32 %v725_v20, %v98_v22 }
  0xa7   :  { %v100_v24 = vadd.f32 %v725_v20, %v99_v23 }
  0xa9   :  { %v104_v27 = vsel %vm103_vm5, %v725_v20, %v100_v24 }
  0xaa   :  { %v109_v30 = vsel %vm106_vm6, %v108_v28, %v104_v27  ;;  %v280_v28 = vld [vmem:[#allocation5 + $0x3] sm:$0x1] }
 0x108   :  { %v120_v29 = vpop.permute.xlu0 %119 }
 0x109   :  { %v122_v31 = vmul.f32 %v120_v29, %v109_v30 }
 0x10b   :  { %124 = vrot.lane.b32.xlu1 %v122_v31, %s815_s6 }
 0x110   :  { %v115_v32 = vpop.permute.xlu0 %114 }
 0x111   :  { %v117_v33 = vmul.f32 %v115_v32, %v109_v30 }
 0x17d   :  { %v125_v34 = vpop.permute.xlu1 %124 }
 0x17e   :  { %v127_v35 = vadd.f32 %v125_v34, %v117_v33 }
 0x180   :  { %726 = vtanh.f32 %v127_v35 }
 0x186   :  { %v727_v36 = vpop.eup %726 }
 0x187   :  { %130 = vrot.lane.b32.xlu1 %v727_v36, %s815_s6 }
 0x1f9   :  { %v131_v37 = vpop.permute.xlu1 %130 }
 0x1fa   :  { %v133_v38 = vmul.f32 %v131_v37, %v109_v30 }
 0x1fc   :  { %135 = vrot.lane.b32.xlu2 %v133_v38, %s816_s3 }
 0x256   :  { %v136_v39 = vpop.permute.xlu2 %135 }
 0x257   :  { %139 = vst.msk [vmem:[#allocation4] sm:$0x1] %vm25_vm0, %v136_v39  ;;  %698 = vmatmul.msk.f32.vlgmr.msra.gmra.mxu2 %vm67_vm2, %v136_v39 }
 0x2da   :  { %v164_v41 = vpop.f32.mrf.mxu2 }
 0x2db   :  { %v167_v42 = vadd.f32 %v164_v41, %v140_v40 }
 0x2dd   :  { %728 = vtanh.f32 %v167_v42  ;;  %v699_v44 = vmul.f32 -1.442695, %v167_v42 }
 0x2df   :  { %730 = vpow2.f32 %v699_v44 }
 0x2e3   :  { %v729_v43 = vpop.eup %728 }
 0x2e4   :  { %190 = vrot.lane.b32.xlu2 %v729_v43, %s815_s6 }
 0x2e5   :  { %v731_v45 = vpop.eup %730 }
 0x2e6   :  { %v171_v46 = vadd.f32 1.0, %v731_v45 }
 0x2e8   :  { %732 = vrcp.f32 %v171_v46  ;;  %v183_v52 = vand.u32 2147483648, %v171_v46  ;;  %vm177_vm8 = vweird.f32 %v171_v46  ;;  %v181_v53 = vand.u32 2147483647, %v171_v46 }
 0x2ea   :  { %v184_v55 = vor.u32 1.1754944e-38, %v183_v52  ;;  %vm182_vm10 = vcmp.eq.f32.partialorder %v181_v53, 8.507059e+37 }
 0x2ee   :  { %v733_v47 = vpop.eup %732 }
 0x2ef   :  { %v173_v48 = vmul.f32 %v733_v47, %v171_v46  ;;  %vm178_vm7 = vweird.f32 %v733_v47 }
 0x2f0   :  { %vm179_vm9 = vmor %vm177_vm8, %vm178_vm7 }
 0x2f1   :  { %v174_v49 = vsub.f32 1.0, %v173_v48 }
 0x2f3   :  { %v175_v50 = vmul.f32 %v733_v47, %v174_v49 }
 0x2f5   :  { %v176_v51 = vadd.f32 %v733_v47, %v175_v50 }
 0x2f7   :  { %v180_v54 = vsel %vm179_vm9, %v733_v47, %v176_v51 }
 0x2f8   :  { %v185_v57 = vsel %vm182_vm10, %v184_v55, %v180_v54  ;;  %v350_v54 = vld [vmem:[#allocation5 + $0x4] sm:$0x1] }
 0x2f9   :  { %v188_v59 = vmul.f32 %v185_v57, %v127_v35 }
 0x33e   :  { %v191_v56 = vpop.permute.xlu2 %190 }
 0x33f   :  { %v193_v58 = vmul.f32 %v191_v56, %v185_v57 }
 0x341   :  { %195 = vrot.lane.b32.xlu0 %v193_v58, %s815_s6 }
 0x3b3   :  { %v196_v60 = vpop.permute.xlu0 %195 }
 0x3b4   :  { %v198_v61 = vadd.f32 %v196_v60, %v188_v59 }
 0x3b6   :  { %734 = vtanh.f32 %v198_v61 }
 0x3bc   :  { %v735_v62 = vpop.eup %734 }
 0x3bd   :  { %201 = vrot.lane.b32.xlu1 %v735_v62, %s815_s6 }
 0x42f   :  { %v202_v63 = vpop.permute.xlu1 %201 }
 0x430   :  { %v204_v0 = vmul.f32 %v202_v63, %v185_v57 }
 0x432   :  { %206 = vrot.lane.b32.xlu2 %v204_v0, %s816_s3 }
 0x48c   :  { %v207_v1 = vpop.permute.xlu2 %206 }
 0x48d   :  { %209 = vst.msk [vmem:[#allocation4 + $0x1] sm:$0x1] %vm25_vm0, %v207_v1  ;;  %700 = vmatmul.msk.f32.vlgmr.msra.gmra.mxu3 %vm67_vm2, %v207_v1 }
 0x510   :  { %v234_v3 = vpop.f32.mrf.mxu3 }
 0x511   :  { %v237_v4 = vadd.f32 %v234_v3, %v210_v2 }
 0x513   :  { %736 = vtanh.f32 %v237_v4  ;;  %v701_v6 = vmul.f32 -1.442695, %v237_v4 }
 0x515   :  { %738 = vpow2.f32 %v701_v6 }
 0x519   :  { %v737_v5 = vpop.eup %736 }
 0x51a   :  { %260 = vrot.lane.b32.xlu0 %v737_v5, %s815_s6 }
 0x51b   :  { %v739_v7 = vpop.eup %738 }
 0x51c   :  { %v241_v8 = vadd.f32 1.0, %v739_v7 }
 0x51e   :  { %740 = vrcp.f32 %v241_v8  ;;  %v253_v14 = vand.u32 2147483648, %v241_v8  ;;  %vm247_vm12 = vweird.f32 %v241_v8  ;;  %v251_v15 = vand.u32 2147483647, %v241_v8 }
 0x520   :  { %v254_v17 = vor.u32 1.1754944e-38, %v253_v14  ;;  %vm252_vm14 = vcmp.eq.f32.partialorder %v251_v15, 8.507059e+37 }
 0x524   :  { %v741_v9 = vpop.eup %740 }
 0x525   :  { %v243_v10 = vmul.f32 %v741_v9, %v241_v8  ;;  %vm248_vm11 = vweird.f32 %v741_v9 }
 0x526   :  { %vm249_vm13 = vmor %vm247_vm12, %vm248_vm11 }
 0x527   :  { %v244_v11 = vsub.f32 1.0, %v243_v10 }
 0x529   :  { %v245_v12 = vmul.f32 %v741_v9, %v244_v11 }
 0x52b   :  { %v246_v13 = vadd.f32 %v741_v9, %v245_v12 }
 0x52d   :  { %v250_v16 = vsel %vm249_vm13, %v741_v9, %v246_v13 }
 0x52e   :  { %v255_v19 = vsel %vm252_vm14, %v254_v17, %v250_v16  ;;  %v420_v16 = vld [vmem:[#allocation5 + $0x5] sm:$0x1] }
 0x52f   :  { %v258_v21 = vmul.f32 %v255_v19, %v198_v61 }
 0x58c   :  { %v261_v18 = vpop.permute.xlu0 %260 }
 0x58d   :  { %v263_v20 = vmul.f32 %v261_v18, %v255_v19 }
 0x58f   :  { %265 = vrot.lane.b32.xlu1 %v263_v20, %s815_s6 }
 0x601   :  { %v266_v22 = vpop.permute.xlu1 %265 }
 0x602   :  { %v268_v23 = vadd.f32 %v266_v22, %v258_v21 }
 0x604   :  { %742 = vtanh.f32 %v268_v23 }
 0x60a   :  { %v743_v24 = vpop.eup %742 }
 0x60b   :  { %271 = vrot.lane.b32.xlu2 %v743_v24, %s815_s6 }
 0x665   :  { %v272_v25 = vpop.permute.xlu2 %271 }
 0x666   :  { %v274_v26 = vmul.f32 %v272_v25, %v255_v19 }
 0x668   :  { %276 = vrot.lane.b32.xlu0 %v274_v26, %s816_s3 }
 0x6da   :  { %v277_v27 = vpop.permute.xlu0 %276 }
 0x6db   :  { %279 = vst.msk [vmem:[#allocation4 + $0x2] sm:$0x1] %vm25_vm0, %v277_v27  ;;  %702 = vmatmul.msk.f32.vlgmr.msrb.gmra.mxu0 %vm67_vm2, %v277_v27 }
 0x758   :  { %v304_v29 = vpop.f32.mrf.mxu0 }
 0x759   :  { %v307_v30 = vadd.f32 %v304_v29, %v280_v28 }
 0x75b   :  { %744 = vtanh.f32 %v307_v30  ;;  %v703_v32 = vmul.f32 -1.442695, %v307_v30 }
 0x75d   :  { %746 = vpow2.f32 %v703_v32 }
 0x761   :  { %v745_v31 = vpop.eup %744 }
 0x762   :  { %330 = vrot.lane.b32.xlu1 %v745_v31, %s815_s6 }
 0x763   :  { %v747_v33 = vpop.eup %746 }
 0x764   :  { %v311_v34 = vadd.f32 1.0, %v747_v33 }
 0x766   :  { %748 = vrcp.f32 %v311_v34  ;;  %v323_v40 = vand.u32 2147483648, %v311_v34  ;;  %vm317_vm1 = vweird.f32 %v311_v34  ;;  %v321_v41 = vand.u32 2147483647, %v311_v34 }
 0x768   :  { %v324_v43 = vor.u32 1.1754944e-38, %v323_v40  ;;  %vm322_vm4 = vcmp.eq.f32.partialorder %v321_v41, 8.507059e+37 }
 0x76c   :  { %v749_v35 = vpop.eup %748 }
 0x76d   :  { %v313_v36 = vmul.f32 %v749_v35, %v311_v34  ;;  %vm318_vm15 = vweird.f32 %v749_v35 }
 0x76e   :  { %vm319_vm3 = vmor %vm317_vm1, %vm318_vm15 }
 0x76f   :  { %v314_v37 = vsub.f32 1.0, %v313_v36 }
 0x771   :  { %v315_v38 = vmul.f32 %v749_v35, %v314_v37 }
 0x773   :  { %v316_v39 = vadd.f32 %v749_v35, %v315_v38 }
 0x775   :  { %v320_v42 = vsel %vm319_vm3, %v749_v35, %v316_v39 }
 0x776   :  { %v325_v45 = vsel %vm322_vm4, %v324_v43, %v320_v42  ;;  %v490_v42 = vld [vmem:[#allocation5 + $0x6] sm:$0x1] }
 0x777   :  { %v328_v47 = vmul.f32 %v325_v45, %v268_v23 }
 0x7d4   :  { %v331_v44 = vpop.permute.xlu1 %330 }
 0x7d5   :  { %v333_v46 = vmul.f32 %v331_v44, %v325_v45 }
 0x7d7   :  { %335 = vrot.lane.b32.xlu2 %v333_v46, %s815_s6 }
 0x831   :  { %v336_v48 = vpop.permute.xlu2 %335 }
 0x832   :  { %v338_v49 = vadd.f32 %v336_v48, %v328_v47 }
 0x834   :  { %750 = vtanh.f32 %v338_v49 }
 0x83a   :  { %v751_v50 = vpop.eup %750 }
 0x83b   :  { %341 = vrot.lane.b32.xlu0 %v751_v50, %s815_s6 }
 0x8ad   :  { %v342_v51 = vpop.permute.xlu0 %341 }
 0x8ae   :  { %v344_v52 = vmul.f32 %v342_v51, %v325_v45 }
 0x8b0   :  { %346 = vrot.lane.b32.xlu1 %v344_v52, %s816_s3 }
 0x922   :  { %v347_v53 = vpop.permute.xlu1 %346 }
 0x923   :  { %349 = vst.msk [vmem:[#allocation4 + $0x3] sm:$0x1] %vm25_vm0, %v347_v53  ;;  %704 = vmatmul.msk.f32.vlgmr.msrb.gmra.mxu1 %vm67_vm2, %v347_v53 }
 0x9a0   :  { %v374_v55 = vpop.f32.mrf.mxu1 }
 0x9a1   :  { %v377_v56 = vadd.f32 %v374_v55, %v350_v54 }
 0x9a3   :  { %752 = vtanh.f32 %v377_v56  ;;  %v705_v58 = vmul.f32 -1.442695, %v377_v56 }
 0x9a5   :  { %754 = vpow2.f32 %v705_v58 }
 0x9a9   :  { %v753_v57 = vpop.eup %752 }
 0x9aa   :  { %400 = vrot.lane.b32.xlu2 %v753_v57, %s815_s6 }
 0x9ab   :  { %v755_v59 = vpop.eup %754 }
 0x9ac   :  { %v381_v60 = vadd.f32 1.0, %v755_v59 }
 0x9ae   :  { %756 = vrcp.f32 %v381_v60  ;;  %v393_v2 = vand.u32 2147483648, %v381_v60  ;;  %vm387_vm6 = vweird.f32 %v381_v60  ;;  %v391_v3 = vand.u32 2147483647, %v381_v60 }
 0x9b0   :  { %v394_v5 = vor.u32 1.1754944e-38, %v393_v2  ;;  %vm392_vm8 = vcmp.eq.f32.partialorder %v391_v3, 8.507059e+37 }
 0x9b4   :  { %v757_v61 = vpop.eup %756 }
 0x9b5   :  { %v383_v62 = vmul.f32 %v757_v61, %v381_v60  ;;  %vm388_vm5 = vweird.f32 %v757_v61 }
 0x9b6   :  { %vm389_vm7 = vmor %vm387_vm6, %vm388_vm5 }
 0x9b7   :  { %v384_v63 = vsub.f32 1.0, %v383_v62 }
 0x9b9   :  { %v385_v0 = vmul.f32 %v757_v61, %v384_v63 }
 0x9bb   :  { %v386_v1 = vadd.f32 %v757_v61, %v385_v0 }
 0x9bd   :  { %v390_v4 = vsel %vm389_vm7, %v757_v61, %v386_v1 }
 0x9be   :  { %v395_v7 = vsel %vm392_vm8, %v394_v5, %v390_v4  ;;  %v560_v4 = vld [vmem:[#allocation5 + $0x7] sm:$0x1] }
 0x9bf   :  { %v398_v9 = vmul.f32 %v395_v7, %v338_v49 }
 0xa04   :  { %v401_v6 = vpop.permute.xlu2 %400 }
 0xa05   :  { %v403_v8 = vmul.f32 %v401_v6, %v395_v7 }
 0xa07   :  { %405 = vrot.lane.b32.xlu0 %v403_v8, %s815_s6 }
 0xa79   :  { %v406_v10 = vpop.permute.xlu0 %405 }
 0xa7a   :  { %v408_v11 = vadd.f32 %v406_v10, %v398_v9 }
 0xa7c   :  { %758 = vtanh.f32 %v408_v11 }
 0xa82   :  { %v759_v12 = vpop.eup %758 }
 0xa83   :  { %411 = vrot.lane.b32.xlu1 %v759_v12, %s815_s6 }
 0xaf5   :  { %v412_v13 = vpop.permute.xlu1 %411 }
 0xaf6   :  { %v414_v14 = vmul.f32 %v412_v13, %v395_v7 }
 0xaf8   :  { %416 = vrot.lane.b32.xlu2 %v414_v14, %s816_s3 }
 0xb52   :  { %v417_v15 = vpop.permute.xlu2 %416 }
 0xb53   :  { %419 = vst.msk [vmem:[#allocation4 + $0x4] sm:$0x1] %vm25_vm0, %v417_v15  ;;  %706 = vmatmul.msk.f32.vlgmr.msrb.gmra.mxu2 %vm67_vm2, %v417_v15 }
 0xbd6   :  { %v444_v17 = vpop.f32.mrf.mxu2 }
 0xbd7   :  { %v447_v18 = vadd.f32 %v444_v17, %v420_v16 }
 0xbd9   :  { %760 = vtanh.f32 %v447_v18  ;;  %v707_v20 = vmul.f32 -1.442695, %v447_v18 }
 0xbdb   :  { %762 = vpow2.f32 %v707_v20 }
 0xbdf   :  { %v761_v19 = vpop.eup %760 }
 0xbe0   :  { %470 = vrot.lane.b32.xlu0 %v761_v19, %s815_s6 }
 0xbe1   :  { %v763_v21 = vpop.eup %762 }
 0xbe2   :  { %v451_v22 = vadd.f32 1.0, %v763_v21 }
 0xbe4   :  { %764 = vrcp.f32 %v451_v22  ;;  %v463_v28 = vand.u32 2147483648, %v451_v22  ;;  %vm457_vm10 = vweird.f32 %v451_v22  ;;  %v461_v29 = vand.u32 2147483647, %v451_v22 }
 0xbe6   :  { %v464_v31 = vor.u32 1.1754944e-38, %v463_v28  ;;  %vm462_vm12 = vcmp.eq.f32.partialorder %v461_v29, 8.507059e+37  ;;  %v640_v29 = vld [vmem:[%s946_s4 + $0x18] sm:$0xff] }
 0xbe7   :  { %656 = vmatpush.msra.mxu1 %v640_v29 }
 0xbea   :  { %v765_v23 = vpop.eup %764 }
 0xbeb   :  { %v453_v24 = vmul.f32 %v765_v23, %v451_v22  ;;  %vm458_vm9 = vweird.f32 %v765_v23 }
 0xbec   :  { %vm459_vm11 = vmor %vm457_vm10, %vm458_vm9 }
 0xbed   :  { %v454_v25 = vsub.f32 1.0, %v453_v24 }
 0xbef   :  { %v455_v26 = vmul.f32 %v765_v23, %v454_v25 }
 0xbf1   :  { %v456_v27 = vadd.f32 %v765_v23, %v455_v26 }
 0xbf3   :  { %v460_v30 = vsel %vm459_vm11, %v765_v23, %v456_v27 }
 0xbf4   :  { %v465_v33 = vsel %vm462_vm12, %v464_v31, %v460_v30  ;;  %v639_v30 = vld [vmem:[%s946_s4 + $0x10] sm:$0xff]  ;;  %v638_v31 = vld [vmem:[%s946_s4 + $0x8] sm:$0xff] }
 0xbf5   :  { %v468_v35 = vmul.f32 %v465_v33, %v408_v11  ;;  %657 = vmatpush.msra.mxu1 %v639_v30 }
 0xbf7   :  { %658 = vmatpush.msra.mxu1 %v638_v31 }
 0xc52   :  { %v471_v32 = vpop.permute.xlu0 %470 }
 0xc53   :  { %v473_v34 = vmul.f32 %v471_v32, %v465_v33  ;;  %v637_v32 = vld [vmem:[%s946_s4] sm:$0xff]  ;;  %s818_s4 = smov [#allocation6]  }
 0xc54   :  { %659 = vmatpush.msra.mxu1 %v637_v32  ;;  %s684_s16 = sshll.u32 %s818_s4, 4  ;;  %s685_s16 = int_to_ptr.vmem [resolvable:$true] %s684_s16 }
 0xc55   :  { %475 = vrot.lane.b32.xlu1 %v473_v34, %s815_s6 }
 0xcc7   :  { %v476_v36 = vpop.permute.xlu1 %475 }
 0xcc8   :  { %v478_v37 = vadd.f32 %v476_v36, %v468_v35  ;;  %v664_v36 = vlaneseq }
 0xcca   :  { %766 = vtanh.f32 %v478_v37 }
 0xcd0   :  { %v767_v38 = vpop.eup %766 }
 0xcd1   :  { %481 = vrot.lane.b32.xlu2 %v767_v38, %s815_s6 }
 0xd2b   :  { %v482_v39 = vpop.permute.xlu2 %481 }
 0xd2c   :  { %v484_v40 = vmul.f32 %v482_v39, %v465_v33 }
 0xd2e   :  { %486 = vrot.lane.b32.xlu0 %v484_v40, %s816_s3 }
 0xda0   :  { %v487_v41 = vpop.permute.xlu0 %486 }
 0xda1   :  { %489 = vst.msk [vmem:[#allocation4 + $0x5] sm:$0x1] %vm25_vm0, %v487_v41  ;;  %708 = vmatmul.msk.f32.vlgmr.msrb.gmra.mxu3 %vm67_vm2, %v487_v41 }
 0xe24   :  { %v514_v43 = vpop.f32.mrf.mxu3 }
 0xe25   :  { %v517_v44 = vadd.f32 %v514_v43, %v490_v42 }
 0xe27   :  { %768 = vtanh.f32 %v517_v44  ;;  %v709_v46 = vmul.f32 -1.442695, %v517_v44 }
 0xe29   :  { %770 = vpow2.f32 %v709_v46 }
 0xe2d   :  { %v769_v45 = vpop.eup %768 }
 0xe2e   :  { %540 = vrot.lane.b32.xlu1 %v769_v45, %s815_s6 }
 0xe2f   :  { %v771_v47 = vpop.eup %770 }
 0xe30   :  { %v521_v48 = vadd.f32 1.0, %v771_v47 }
 0xe32   :  { %772 = vrcp.f32 %v521_v48  ;;  %v533_v54 = vand.u32 2147483648, %v521_v48  ;;  %vm527_vm14 = vweird.f32 %v521_v48  ;;  %v531_v55 = vand.u32 2147483647, %v521_v48 }
 0xe34   :  { %v534_v57 = vor.u32 1.1754944e-38, %v533_v54  ;;  %vm532_vm1 = vcmp.eq.f32.partialorder %v531_v55, 8.507059e+37 }
 0xe38   :  { %v773_v49 = vpop.eup %772 }
 0xe39   :  { %v523_v50 = vmul.f32 %v773_v49, %v521_v48  ;;  %vm528_vm13 = vweird.f32 %v773_v49 }
 0xe3a   :  { %vm529_vm15 = vmor %vm527_vm14, %vm528_vm13 }
 0xe3b   :  { %v524_v51 = vsub.f32 1.0, %v523_v50 }
 0xe3d   :  { %v525_v52 = vmul.f32 %v773_v49, %v524_v51 }
 0xe3f   :  { %v526_v53 = vadd.f32 %v773_v49, %v525_v52 }
 0xe41   :  { %v530_v56 = vsel %vm529_vm15, %v773_v49, %v526_v53 }
 0xe42   :  { %v535_v59 = vsel %vm532_vm1, %v534_v57, %v530_v56 }
 0xe43   :  { %v538_v61 = vmul.f32 %v535_v59, %v478_v37  ;;  %v665_v37 = vand.u32 127, %v664_v36 }
 0xe45   :  { %vm666_vm7 = vcmp.lt.s32.totalorder %v665_v37, 8 }
 0xea0   :  { %v541_v58 = vpop.permute.xlu1 %540 }
 0xea1   :  { %v543_v60 = vmul.f32 %v541_v58, %v535_v59 }
 0xea3   :  { %545 = vrot.lane.b32.xlu2 %v543_v60, %s815_s6 }
 0xefd   :  { %v546_v62 = vpop.permute.xlu2 %545 }
 0xefe   :  { %v548_v63 = vadd.f32 %v546_v62, %v538_v61 }
 0xf00   :  { %774 = vtanh.f32 %v548_v63 }
 0xf06   :  { %v775_v0 = vpop.eup %774 }
 0xf07   :  { %551 = vrot.lane.b32.xlu0 %v775_v0, %s815_s6 }
 0xf79   :  { %v552_v1 = vpop.permute.xlu0 %551 }
 0xf7a   :  { %v554_v2 = vmul.f32 %v552_v1, %v535_v59 }
 0xf7c   :  { %556 = vrot.lane.b32.xlu1 %v554_v2, %s816_s3 }
 0xfee   :  { %v557_v3 = vpop.permute.xlu1 %556 }
 0xfef   :  { %559 = vst.msk [vmem:[#allocation4 + $0x6] sm:$0x1] %vm25_vm0, %v557_v3  ;;  %710 = vmatmul.msk.f32.vlgmr.msra.gmra.mxu0 %vm67_vm2, %v557_v3 }
0x106c   :  { %v584_v5 = vpop.f32.mrf.mxu0 }
0x106d   :  { %v587_v6 = vadd.f32 %v584_v5, %v560_v4 }
0x106f   :  { %776 = vtanh.f32 %v587_v6  ;;  %v711_v8 = vmul.f32 -1.442695, %v587_v6 }
0x1071   :  { %778 = vpow2.f32 %v711_v8 }
0x1075   :  { %v777_v7 = vpop.eup %776 }
0x1076   :  { %610 = vrot.lane.b32.xlu2 %v777_v7, %s815_s6 }
0x1077   :  { %v779_v9 = vpop.eup %778 }
0x1078   :  { %v591_v10 = vadd.f32 1.0, %v779_v9 }
0x107a   :  { %780 = vrcp.f32 %v591_v10  ;;  %v603_v16 = vand.u32 2147483648, %v591_v10  ;;  %vm597_vm4 = vweird.f32 %v591_v10  ;;  %v601_v17 = vand.u32 2147483647, %v591_v10 }
0x107c   :  { %v604_v19 = vor.u32 1.1754944e-38, %v603_v16  ;;  %vm602_vm6 = vcmp.eq.f32.partialorder %v601_v17, 8.507059e+37 }
0x1080   :  { %v781_v11 = vpop.eup %780 }
0x1081   :  { %v593_v12 = vmul.f32 %v781_v11, %v591_v10  ;;  %vm598_vm3 = vweird.f32 %v781_v11 }
0x1082   :  { %vm599_vm5 = vmor %vm597_vm4, %vm598_vm3 }
0x1083   :  { %v594_v13 = vsub.f32 1.0, %v593_v12 }
0x1085   :  { %v595_v14 = vmul.f32 %v781_v11, %v594_v13 }
0x1087   :  { %v596_v15 = vadd.f32 %v781_v11, %v595_v14 }
0x1089   :  { %v600_v18 = vsel %vm599_vm5, %v781_v11, %v596_v15 }
0x108a   :  { %v605_v21 = vsel %vm602_vm6, %v604_v19, %v600_v18 }
0x108b   :  { %v608_v23 = vmul.f32 %v605_v21, %v548_v63 }
0x10d0   :  { %v611_v20 = vpop.permute.xlu2 %610 }
0x10d1   :  { %v613_v22 = vmul.f32 %v611_v20, %v605_v21 }
0x10d3   :  { %615 = vrot.lane.b32.xlu0 %v613_v22, %s815_s6 }
0x1145   :  { %v616_v24 = vpop.permute.xlu0 %615 }
0x1146   :  { %v618_v25 = vadd.f32 %v616_v24, %v608_v23 }
0x1148   :  { %782 = vtanh.f32 %v618_v25 }
0x114e   :  { %v783_v26 = vpop.eup %782 }
0x114f   :  { %621 = vrot.lane.b32.xlu1 %v783_v26, %s815_s6 }
0x11c1   :  { %v622_v27 = vpop.permute.xlu1 %621 }
0x11c2   :  { %v624_v28 = vmul.f32 %v622_v27, %v605_v21 }
0x11c4   :  { %626 = vrot.lane.b32.xlu2 %v624_v28, %s816_s3 }
0x11cc   :  { %632 = vrot.lane.b32.xlu2 %v618_v25, %s817_s7 }
0x121e   :  { %v627_v33 = vpop.permute.xlu2 %626 }
0x121f   :  { %629 = vst.msk [vmem:[#allocation4 + $0x7] sm:$0x1] %vm25_vm0, %v627_v33 }
0x1220   :  { %630 = vst.msk [vmem:[#allocation2] sm:$0x1] %vm25_vm0, %v627_v33 }
0x1226   :  { %v633_v34 = vpop.permute.xlu2 %632  ;;  %v636_v35 = vld [vmem:[#allocation4] sm:$0xff] }
0x1227   :  { %635 = vst.msk [vmem:[#allocation3] sm:$0x1] %vm25_vm0, %v633_v34  ;;  %712 = vmatmul.msk.f32.vlgmr.msra.gmra.mxu1 %vm67_vm2, %v636_v35 }
0x12a4   :  { %v661_v38 = vpop.f32.mrf.mxu1 }
0x12a5   :  { %v667_v39 = vsel %vm666_vm7, %v661_v38, -1e+30 }
0x12a6   :  { %668 = vmax.xlane.f32.xlu0 %v667_v39 }
0x1319   :  { %v669_v40 = vpop.xlane.xlu0 %668 }
0x131a   :  { %v670_v41 = vsub.f32 %v667_v39, %v669_v40 }
0x131c   :  { %v671_v42 = vmul.f32 1.442695, %v670_v41 }
0x131e   :  { %784 = vpow2.f32 %v671_v42 }
0x1324   :  { %v785_v43 = vpop.eup %784 }
0x1325   :  { %673 = vadd.xlane.f32.xlu1 %v785_v43 }
0x1398   :  { %v674_v44 = vpop.xlane.xlu1 %673 }
0x1399   :  { %786 = vlog2.f32 %v674_v44 }
0x139f   :  { %v787_v45 = vpop.eup %786 }
0x13a0   :  { %v676_v46 = vmul.f32 0.6931472, %v787_v45 }
0x13a2   :  { %v677_v47 = vsub.f32 %v670_v41, %v676_v46 }
0x13a4   :  { %678 = vst [vmem:[#allocation6] sm:$0xff] %v677_v47 }
0x13a5   :  { %689 = dma.vmem_to_hbm [thread:$0]  %s685_s16, 128, %s687_s19, [#allocation7]  }
0x13a6   :  { %812 = dma.done.wait [#allocation7], 128  }
0x13a7   :  { %813 = vsyncadd [#allocation7], 4294967168 }
0x13a8   :  { %694 = vsyncpa [#allocation7], 1 }

</bundles_post_ra>
